<compile_context>
chip_gen: v7x
topology: tpu7x:2x2x1
jax: 0.10.0
libtpu: 0.0.40
codegen_flags: <defaults>
</compile_context>

<pallas_src>
import re
import numpy as np
import jax
import jax.numpy as jnp
from jax.experimental import pallas as pl
from jax.experimental.pallas import tpu as pltpu

# -----------------------------------------------------------------------------
# Synthetic, deterministic stand-in for OrbitalMapper (e3tb) metadata.
# full_basis = ['1s', '2s', '1p'];  atom type 0 -> full basis, type 1 -> no '2s'.
# -----------------------------------------------------------------------------
ANGLR_M_ID = {"s": 0, "p": 1, "d": 2, "f": 3}
FULL_BASIS = ["1s", "2s", "1p"]
TYPE_ORBITALS = {0: ["1s", "2s", "1p"], 1: ["1s", "1p"]}


def _l_of(orb):
    return ANGLR_M_ID[re.findall("[a-zA-Z]+", orb)[0]]


def _build_meta():
    norb_of = [2 * _l_of(o) + 1 for o in FULL_BASIS]
    starts = np.concatenate([[0], np.cumsum(norb_of)[:-1]]).astype(np.int64)
    full_basis_norb = int(np.sum(norb_of))

    orbpair_maps = {}
    off = 0
    for i, iorb in enumerate(FULL_BASIS):
        for j, jorb in enumerate(FULL_BASIS):
            if i <= j:
                ni, nj = norb_of[i], norb_of[j]
                orbpair_maps[iorb + "-" + jorb] = slice(off, off + ni * nj)
                off += ni * nj
    feat_dim = off

    rows, cols, feats, facs = [], [], [], []
    for i, iorb in enumerate(FULL_BASIS):
        for j, jorb in enumerate(FULL_BASIS):
            if i > j:
                continue
            ni, nj = norb_of[i], norb_of[j]
            sl = orbpair_maps[iorb + "-" + jorb]
            factor = 0.5 if iorb == jorb else 1.0
            for a in range(ni):
                for b in range(nj):
                    rows.append(starts[i] + a)
                    cols.append(starts[j] + b)
                    feats.append(sl.start + a * nj + b)
                    facs.append(factor)

    mask_to_basis, atom_norb = {}, {}
    for t, orbs in TYPE_ORBITALS.items():
        m = np.zeros(full_basis_norb, dtype=bool)
        for o in orbs:
            i = FULL_BASIS.index(o)
            m[starts[i]:starts[i] + norb_of[i]] = True
        mask_to_basis[t] = m
        atom_norb[t] = int(m.sum())

    return dict(
        norb_of=norb_of, starts=starts, full_basis_norb=full_basis_norb,
        orbpair_maps=orbpair_maps, feat_dim=feat_dim,
        scat_rows=np.array(rows, np.int64), scat_cols=np.array(cols, np.int64),
        scat_feats=np.array(feats, np.int64), scat_facs=np.array(facs, np.float32),
        mask_to_basis=mask_to_basis, atom_norb=atom_norb)


META = _build_meta()


def _round_up(x, m):
    return -(-x // m) * m


def _cdiv(a, b):
    return -(-a // b)


# -----------------------------------------------------------------------------
# Pallas kernel.  Grid = (outer, middle, k-inner).  K (edge contraction) is
# tiled and accumulated into f32 VMEM scratch; onsite is added at writeback.
#   Re_tile = sum_k LHS_sin_tile @ Splus_tile  + Onsite_tile (broadcast)
#   Im_tile = sum_k LHS_cos_tile @ Sminus_tile
# -----------------------------------------------------------------------------
def _dhdk_kernel(lhs_sin_ref, lhs_cos_ref, splus_ref, sminus_ref, onsite_ref,
                 re_ref, im_ref, acc_re_ref, acc_im_ref):
    k = pl.program_id(2)

    @pl.when(k == 0)
    def _():
        acc_re_ref[...] = jnp.zeros_like(acc_re_ref)
        acc_im_ref[...] = jnp.zeros_like(acc_im_ref)

    acc_re_ref[...] += jnp.dot(lhs_sin_ref[...], splus_ref[...],
                               preferred_element_type=jnp.float32)
    acc_im_ref[...] += jnp.dot(lhs_cos_ref[...], sminus_ref[...],
                               preferred_element_type=jnp.float32)

    @pl.when(k == pl.num_programs(2) - 1)
    def _():
        re_ref[...] = acc_re_ref[...] + onsite_ref[...]
        im_ref[...] = acc_im_ref[...]


def _vmem_budgets():
    """(vmem_limit_bytes, double-buffered-tile budget) per TPU generation."""
    cap = 64 * 1024 * 1024                      # conservative: v7x per-TC VMEM
    try:
        info = pltpu.get_tpu_info()
        cap = int(getattr(info, "vmem_capacity_bytes", cap) or cap)
    except Exception:
        pass
    if cap >= 96 * 1024 * 1024:                 # v5e / v6e: 128 MiB physical
        return 100 * 1024 * 1024, 72 * 1024 * 1024
    return 48 * 1024 * 1024, 36 * 1024 * 1024   # v7x-class: 64 MiB physical


def _choose_tiles(M, NN, n_edges, tile_budget):
    """Balanced TM / TK; TN from what is left of the double-buffered budget."""
    # TM: balanced multiple of 8, capped at 256 (minimal M padding waste).
    TM_CAP = 256
    num_m = max(1, _cdiv(M, TM_CAP))
    TM = _round_up(_cdiv(M, num_m), 8)
    M_pad = num_m * TM

    # TK: balanced multiple of 128, capped at 512.
    TK_CAP = 512
    E0 = _round_up(max(n_edges, 1), 128)
    num_k = max(1, _cdiv(E0, TK_CAP))
    TK = _round_up(_cdiv(E0, num_k), 128)
    E_pad = num_k * TK

    # Per-step VMEM (f32 words):
    #   lhs (2 arrays x 2 buf): 4*TM*TK       S (2 x 2 buf): 4*TK*TN
    #   out (2 x 2 buf):        4*TM*TN       acc scratch:   2*TM*TN
    #   onsite (2 buf, sublane-padded to 8):  16*TN
    words = tile_budget // 4
    fixed = 4 * TM * TK
    per_tn = 4 * TK + 6 * TM + 16
    tn_words = max(words - fixed, per_tn * 128) // per_tn
    TN = max(128, (tn_words // 128) * 128)

    NN128 = _round_up(NN, 128)
    TN = min(TN, NN128)
    num_nn = _cdiv(NN128, TN)
    TN = _round_up(_cdiv(NN, num_nn), 128)      # balance TN against NN
    nn_pad = num_nn * TN

    return TM, M_pad, num_m, TK, E_pad, num_k, TN, nn_pad, num_nn


def hr2dhk_forward(orbpair_hopping, orbpair_onsite, dr_ang, atom_type,
                   kpoints, edge_index, edge_cell_shift, direction="xyz"):
    dir2ind = {"x": 0, "y": 1, "z": 2}
    uniq_direcs = sorted(set(direction))
    assert len(uniq_direcs) > 0, "direction should be provided."
    for d in uniq_direcs:
        assert d in dir2ind, "direction should be x, y or z."
    n_dirs = len(uniq_direcs)

    FB = META["full_basis_norb"]
    n_edges = orbpair_hopping.shape[0]
    n_atoms = orbpair_onsite.shape[0]
    nk = kpoints.shape[0]

    # ------------------------------------------------------------------ glue
    # Static numpy index bookkeeping: FB index -> global orbital index per atom.
    atom_type = np.asarray(atom_type).reshape(-1)
    edge_index = np.asarray(edge_index)
    fb2glob = np.full((n_atoms, FB), -1, np.int64)
    ist = 0
    for a in range(n_atoms):
        bi = np.nonzero(META["mask_to_basis"][int(atom_type[a])])[0]
        fb2glob[a, bi] = np.arange(ist, ist + bi.size)
        ist += bi.size
    all_norb = int(ist)
    NN = all_norb * all_norb

    rows, cols = META["scat_rows"], META["scat_cols"]
    feats, facs = META["scat_feats"], META["scat_facs"]

    # Edge blocks via pure GATHERS (no scatter-add): every flat position n of a
    # per-edge (all_norb x all_norb) block has at most one forward (upper-tri)
    # and one transposed source feature, so static (E, NN) index/factor maps
    # turn Splus/Sminus into two take_along_axis gathers plus elementwise math.
    ia, ja = edge_index[0].astype(np.int64), edge_index[1].astype(np.int64)
    grow = fb2glob[ia[:, None], rows[None, :]]                  # (E, P)
    gcol = fb2glob[ja[:, None], cols[None, :]]                  # (E, P)
    valid = (grow >= 0) & (gcol >= 0)
    e_sel, p_sel = np.nonzero(valid)
    n_fwd = grow[valid] * all_norb + gcol[valid]
    n_bwd = gcol[valid] * all_norb + grow[valid]

    feat_fwd = np.zeros((n_edges, NN), np.int32)
    fac_fwd = np.zeros((n_edges, NN), np.float32)
    feat_bwd = np.zeros((n_edges, NN), np.int32)
    fac_bwd = np.zeros((n_edges, NN), np.float32)
    feat_fwd[e_sel, n_fwd] = feats[p_sel]
    fac_fwd[e_sel, n_fwd] = facs[p_sel]
    feat_bwd[e_sel, n_bwd] = feats[p_sel]
    fac_bwd[e_sel, n_bwd] = facs[p_sel]

    hop = orbpair_hopping.astype(jnp.float32)
    g_fwd = jnp.take_along_axis(hop, jnp.asarray(feat_fwd), axis=1) * jnp.asarray(fac_fwd)
    g_bwd = jnp.take_along_axis(hop, jnp.asarray(feat_bwd), axis=1) * jnp.asarray(fac_bwd)
    splus = g_fwd + g_bwd                                       # (E, NN): S + S^T
    sminus = g_fwd - g_bwd                                      # (E, NN): S - S^T

    # Onsite blocks (Hermitian-symmetrized): gathers into a single (NN,) vector.
    aa = np.arange(n_atoms, dtype=np.int64)
    grow_o = fb2glob[aa[:, None], rows[None, :]]
    gcol_o = fb2glob[aa[:, None], cols[None, :]]
    valid_o = (grow_o >= 0) & (gcol_o >= 0)
    a_sel, po_sel = np.nonzero(valid_o)
    no_f = grow_o[valid_o] * all_norb + gcol_o[valid_o]
    no_b = gcol_o[valid_o] * all_norb + grow_o[valid_o]

    oatom_f = np.zeros((NN,), np.int32); ofeat_f = np.zeros((NN,), np.int32)
    ofac_f = np.zeros((NN,), np.float32)
    oatom_b = np.zeros((NN,), np.int32); ofeat_b = np.zeros((NN,), np.int32)
    ofac_b = np.zeros((NN,), np.float32)
    oatom_f[no_f] = a_sel; ofeat_f[no_f] = feats[po_sel]; ofac_f[no_f] = facs[po_sel]
    oatom_b[no_b] = a_sel; ofeat_b[no_b] = feats[po_sel]; ofac_b[no_b] = facs[po_sel]

    ons = orbpair_onsite.astype(jnp.float32)
    onsite_sym = (ons[jnp.asarray(oatom_f), jnp.asarray(ofeat_f)] * jnp.asarray(ofac_f)
                  + ons[jnp.asarray(oatom_b), jnp.asarray(ofeat_b)] * jnp.asarray(ofac_b))

    # --------------------------------------------------------- tiling choices
    nk_pad = _round_up(max(nk, 1), 8)
    M = n_dirs * nk_pad                              # directions stacked into M
    vmem_limit, tile_budget = _vmem_budgets()
    TM, M_pad, num_m, TK, E_pad, num_k, TN, nn_pad, num_nn = _choose_tiles(
        M, NN, n_edges, tile_budget)

    # ------------------------------------------------------- kernel operands
    # LHS (hoisted transcendentals + -dr scaling, done once in the wrapper):
    #   lhs_sin[d*nk_pad + k, e] = sin(phi[k,e]) * (-dr[e, d])
    phi = 2.0 * jnp.pi * (kpoints.astype(jnp.float32)
                          @ edge_cell_shift.astype(jnp.float32).T)       # (nk, E)
    sphi, cphi = jnp.sin(phi), jnp.cos(phi)
    negdr = -jnp.stack([dr_ang[:, dir2ind[d]] for d in uniq_direcs],
                       axis=0).astype(jnp.float32)                       # (D, E)
    pad3 = ((0, 0), (0, nk_pad - nk), (0, E_pad - n_edges))
    lhs_sin = jnp.pad(sphi[None, :, :] * negdr[:, None, :], pad3).reshape(M, E_pad)
    lhs_cos = jnp.pad(cphi[None, :, :] * negdr[:, None, :], pad3).reshape(M, E_pad)
    lhs_sin = jnp.pad(lhs_sin, ((0, M_pad - M), (0, 0)))
    lhs_cos = jnp.pad(lhs_cos, ((0, M_pad - M), (0, 0)))

    splus_p = jnp.pad(splus, ((0, E_pad - n_edges), (0, nn_pad - NN)))
    sminus_p = jnp.pad(sminus, ((0, E_pad - n_edges), (0, nn_pad - NN)))
    onsite_p = jnp.pad(onsite_sym, (0, nn_pad - NN)).reshape(1, nn_pad)

    # ----------------------------------------- grid nesting by operand traffic
    # When num_k == 1 the operand whose index is constant over the middle axis
    # is DMA'd from HBM exactly once; choose the nesting that streams the
    # larger operand only once.  (For num_k > 1 both orderings cost the same.)
    lhs_bytes = 2 * M_pad * E_pad * 4
    s_bytes = 2 * E_pad * nn_pad * 4
    traffic_m_outer = (lhs_bytes if num_k == 1 else num_nn * lhs_bytes) + num_m * s_bytes
    traffic_j_outer = num_nn * lhs_bytes + (s_bytes if num_k == 1 else num_m * s_bytes)
    m_outer = traffic_m_outer <= traffic_j_outer

    if m_outer:
        grid = (num_m, num_nn, num_k)
        lhs_map = lambda m, j, k: (m, k)
        s_map = lambda m, j, k: (k, j)
        on_map = lambda m, j, k: (0, j)
        out_map = lambda m, j, k: (m, j)
        hbm_read = traffic_m_outer
    else:
        grid = (num_nn, num_m, num_k)
        lhs_map = lambda j, m, k: (m, k)
        s_map = lambda j, m, k: (k, j)
        on_map = lambda j, m, k: (0, j)
        out_map = lambda j, m, k: (m, j)
        hbm_read = traffic_j_outer

    cost = pl.CostEstimate(
        flops=2 * 2 * M_pad * E_pad * nn_pad,
        transcendentals=0,
        bytes_accessed=int(hbm_read + 4 * nn_pad + 2 * 4 * M_pad * nn_pad))

    # TODO(synk): optional bf16 LHS (v6e/v7x MXU-native) is omitted to keep the
    # 5e-4 tolerance; flip the dtype of lhs_sin/lhs_cos+S here if acceptable.
    re_out, im_out = pl.pallas_call(
        _dhdk_kernel,
        out_shape=(jax.ShapeDtypeStruct((M_pad, nn_pad), jnp.float32),
                   jax.ShapeDtypeStruct((M_pad, nn_pad), jnp.float32)),
        grid=grid,
        in_specs=[
            pl.BlockSpec((TM, TK), lhs_map),     # lhs_sin
            pl.BlockSpec((TM, TK), lhs_map),     # lhs_cos
            pl.BlockSpec((TK, TN), s_map),       # S + S^T
            pl.BlockSpec((TK, TN), s_map),       # S - S^T
            pl.BlockSpec((1, TN), on_map),       # onsite (broadcast add)
        ],
        out_specs=(pl.BlockSpec((TM, TN), out_map),
                   pl.BlockSpec((TM, TN), out_map)),
        scratch_shapes=[pltpu.VMEM((TM, TN), jnp.float32),
                        pltpu.VMEM((TM, TN), jnp.float32)],
        compiler_params=pltpu.CompilerParams(
            dimension_semantics=("parallel", "parallel", "arbitrary"),
            vmem_limit_bytes=int(vmem_limit)),
        cost_estimate=cost,
    )(lhs_sin, lhs_cos, splus_p, sminus_p, onsite_p)

    # ------------------------------------------------------- output assembly
    dHdk = {}
    for di, d in enumerate(uniq_direcs):
        r0 = di * nk_pad
        re_d = re_out[r0:r0 + nk, :NN].reshape(nk, all_norb, all_norb)
        im_d = im_out[r0:r0 + nk, :NN].reshape(nk, all_norb, all_norb)
        dHdk[d] = (re_d + 1j * im_d).astype(jnp.complex64)
    return dHdk


# -----------------------------------------------------------------------------
# Pure numpy reference mirroring the PyTorch forward loops exactly.
# -----------------------------------------------------------------------------
def reference_dhdk(hopping, onsite_feat, dr, atom_type, kpts, edge_index,
                   cell_shift, direction="xyz"):
    dir2ind = {"x": 0, "y": 1, "z": 2}
    uniq = sorted(set(direction))
    hopping = np.asarray(hopping, np.float64)
    onsite_feat = np.asarray(onsite_feat, np.float64)
    dr = np.asarray(dr, np.float64)
    kpts = np.asarray(kpts, np.float64)
    cell_shift = np.asarray(cell_shift, np.float64)
    atom_type = np.asarray(atom_type).reshape(-1)
    edge_index = np.asarray(edge_index)
    FB = META["full_basis_norb"]
    nE, nA, nk = hopping.shape[0], onsite_feat.shape[0], kpts.shape[0]

    bondwise = {d: np.zeros((nE, FB, FB)) for d in uniq}
    onsite_block = np.zeros((nA, FB, FB))
    ist = 0
    for i, iorb in enumerate(FULL_BASIS):
        jst = 0
        li = _l_of(iorb)
        for j, jorb in enumerate(FULL_BASIS):
            lj = _l_of(jorb)
            factor = 0.5 if iorb == jorb else 1.0
            if i <= j:
                sl = META["orbpair_maps"][iorb + "-" + jorb]
                for d in uniq:
                    bondwise[d][:, ist:ist + 2 * li + 1, jst:jst + 2 * lj + 1] = factor * (
                        -1 * dr[:, [dir2ind[d]]] * hopping[:, sl]
                    ).reshape(-1, 2 * li + 1, 2 * lj + 1)
                onsite_block[:, ist:ist + 2 * li + 1, jst:jst + 2 * lj + 1] = factor * \
                    onsite_feat[:, sl].reshape(-1, 2 * li + 1, 2 * lj + 1)
            jst += 2 * lj + 1
        ist += 2 * li + 1

    all_norb = int(sum(META["atom_norb"][int(t)] for t in atom_type))
    dHdk = {d: np.zeros((nk, all_norb, all_norb), np.complex128) for d in uniq}
    atom_slices = {}
    ist = 0
    for a in range(nA):
        mask = META["mask_to_basis"][int(atom_type[a])]
        mob = onsite_block[a][mask][:, mask]
        for d in uniq:
            dHdk[d][:, ist:ist + mob.shape[0], ist:ist + mob.shape[1]] = mob
        atom_slices[a] = slice(ist, ist + mob.shape[0])
        ist += mob.shape[0]
    for e in range(nE):
        ia, ja = int(edge_index[0, e]), int(edge_index[1, e])
        imask = META["mask_to_basis"][int(atom_type[ia])]
        jmask = META["mask_to_basis"][int(atom_type[ja])]
        phase = np.exp(-1j * 2 * np.pi * (kpts @ cell_shift[e])).reshape(-1, 1, 1)
        for d in uniq:
            hb = bondwise[d][e][imask][:, jmask]
            dHdk[d][:, atom_slices[ia], atom_slices[ja]] += 1j * hb * phase
    for d in uniq:
        dHdk[d] = dHdk[d] + np.conj(np.transpose(dHdk[d], (0, 2, 1)))
    return dHdk


if __name__ == "__main__":
    key = jax.random.PRNGKey(0)
    k1, k2, k3, k4, k5 = jax.random.split(key, 5)

    n_atoms, n_edges, nk = 4, 6, 8
    atom_type = np.array([0, 1, 0, 1], np.int32)
    edge_index = np.array([[0, 1, 2, 3, 0, 2],
                           [1, 2, 3, 0, 2, 1]], np.int32)
    feat_dim = META["feat_dim"]                         # 18 for this basis
    hopping = jax.random.normal(k1, (n_edges, feat_dim), jnp.float32)
    onsite_feat = jax.random.normal(k2, (n_atoms, feat_dim), jnp.float32)
    dr_ang = jax.random.normal(k3, (n_edges, 3), jnp.float32)
    cell_shift = jax.random.randint(k4, (n_edges, 3), -1, 2).astype(jnp.float32)
    kpts = jax.random.uniform(k5, (nk, 3), jnp.float32)

    dHdk = hr2dhk_forward(hopping, onsite_feat, dr_ang, atom_type, kpts,
                          edge_index, cell_shift, direction="xyz")
    jax.block_until_ready(dHdk)

    ref = reference_dhdk(hopping, onsite_feat, dr_ang, atom_type, kpts,
                         edge_index, cell_shift, direction="xyz")
    for d in sorted(set("xyz")):
        np.testing.assert_allclose(np.asarray(dHdk[d]), ref[d],
                                   atol=5e-4, rtol=5e-4)
    print("KERNEL_OK")
</pallas_src>

<mosaic_0001>
module attributes {stable_mosaic.version = 11 : i64} {
  func.func @_dhdk_kernel(%arg0: i32, %arg1: i32, %arg2: i32, %arg3: memref<24x128xf32, #tpu.memory_space<vmem>>, %arg4: memref<24x128xf32, #tpu.memory_space<vmem>>, %arg5: memref<128x384xf32, #tpu.memory_space<vmem>>, %arg6: memref<128x384xf32, #tpu.memory_space<vmem>>, %arg7: memref<1x384xf32, #tpu.memory_space<vmem>>, %arg8: memref<24x384xf32, #tpu.memory_space<vmem>>, %arg9: memref<24x384xf32, #tpu.memory_space<vmem>>, %arg10: memref<24x384xf32, #tpu.memory_space<vmem>>, %arg11: memref<24x384xf32, #tpu.memory_space<vmem>>) attributes {dimension_semantics = [#tpu.dimension_semantics<parallel>, #tpu.dimension_semantics<parallel>, #tpu.dimension_semantics<arbitrary>], iteration_bounds = array<i64: 1, 1, 1>, scalar_prefetch = 0 : i64, scratch_operands = 2 : i64, tpu.core_type = #tpu.core_type<tc>, window_params = [{transform_indices = @transform_0, window_bounds = array<i64: 24, 128>}, {transform_indices = @transform_1, window_bounds = array<i64: 24, 128>}, {transform_indices = @transform_2, window_bounds = array<i64: 128, 384>}, {transform_indices = @transform_3, window_bounds = array<i64: 128, 384>}, {transform_indices = @transform_4, window_bounds = array<i64: 1, 384>}, {transform_indices = @transform_5, window_bounds = array<i64: 24, 384>}, {transform_indices = @transform_6, window_bounds = array<i64: 24, 384>}]} {
    %c0_i32 = arith.constant 0 : i32
    %0 = arith.cmpi eq, %arg2, %c0_i32 : i32
    %1 = arith.extui %0 : i1 to i32
    %c0_i32_0 = arith.constant 0 : i32
    %2 = arith.cmpi ne, %1, %c0_i32_0 : i32
    scf.if %2 {
      %cst_19 = arith.constant 0.000000e+00 : f32
      %18 = vector.broadcast %cst_19 : f32 to vector<24x384xf32>
      %c0_20 = arith.constant 0 : index
      %c0_21 = arith.constant 0 : index
      %19 = vector.load %arg10[%c0_20, %c0_21] : memref<24x384xf32, #tpu.memory_space<vmem>>, vector<24x384xf32>
      tpu.vector_store %arg10[%c0_20, %c0_21], %18 {strides = array<i32>} : memref<24x384xf32, #tpu.memory_space<vmem>>, vector<24x384xf32>,
      %cst_22 = arith.constant 0.000000e+00 : f32
      %20 = vector.broadcast %cst_22 : f32 to vector<24x384xf32>
      %c0_23 = arith.constant 0 : index
      %c0_24 = arith.constant 0 : index
      %21 = vector.load %arg11[%c0_23, %c0_24] : memref<24x384xf32, #tpu.memory_space<vmem>>, vector<24x384xf32>
      tpu.vector_store %arg11[%c0_23, %c0_24], %20 {strides = array<i32>} : memref<24x384xf32, #tpu.memory_space<vmem>>, vector<24x384xf32>,
    } else {
    }
    %c0 = arith.constant 0 : index
    %c0_1 = arith.constant 0 : index
    %3 = vector.load %arg10[%c0, %c0_1] : memref<24x384xf32, #tpu.memory_space<vmem>>, vector<24x384xf32>
    %c0_2 = arith.constant 0 : index
    %c0_3 = arith.constant 0 : index
    %4 = vector.load %arg3[%c0_2, %c0_3] : memref<24x128xf32, #tpu.memory_space<vmem>>, vector<24x128xf32>
    %c0_4 = arith.constant 0 : index
    %c0_5 = arith.constant 0 : index
    %5 = vector.load %arg5[%c0_4, %c0_5] : memref<128x384xf32, #tpu.memory_space<vmem>>, vector<128x384xf32>
    %cst = arith.constant dense<0.000000e+00> : vector<24x384xf32>
    %6 = tpu.matmul %4, %5, %cst {dimension_numbers = #tpu.dot_dimension_numbers<[1], [0], [0], [1], [0, 0, 1, 1], [], []>} : vector<24x128xf32>, vector<128x384xf32>, vector<24x384xf32> -> vector<24x384xf32>
    %7 = arith.addf %3, %6 : vector<24x384xf32>
    %c0_6 = arith.constant 0 : index
    %c0_7 = arith.constant 0 : index
    %8 = vector.load %arg10[%c0_6, %c0_7] : memref<24x384xf32, #tpu.memory_space<vmem>>, vector<24x384xf32>
    tpu.vector_store %arg10[%c0_6, %c0_7], %7 {strides = array<i32>} : memref<24x384xf32, #tpu.memory_space<vmem>>, vector<24x384xf32>,
    %c0_8 = arith.constant 0 : index
    %c0_9 = arith.constant 0 : index
    %9 = vector.load %arg11[%c0_8, %c0_9] : memref<24x384xf32, #tpu.memory_space<vmem>>, vector<24x384xf32>
    %c0_10 = arith.constant 0 : index
    %c0_11 = arith.constant 0 : index
    %10 = vector.load %arg4[%c0_10, %c0_11] : memref<24x128xf32, #tpu.memory_space<vmem>>, vector<24x128xf32>
    %c0_12 = arith.constant 0 : index
    %c0_13 = arith.constant 0 : index
    %11 = vector.load %arg6[%c0_12, %c0_13] : memref<128x384xf32, #tpu.memory_space<vmem>>, vector<128x384xf32>
    %cst_14 = arith.constant dense<0.000000e+00> : vector<24x384xf32>
    %12 = tpu.matmul %10, %11, %cst_14 {dimension_numbers = #tpu.dot_dimension_numbers<[1], [0], [0], [1], [0, 0, 1, 1], [], []>} : vector<24x128xf32>, vector<128x384xf32>, vector<24x384xf32> -> vector<24x384xf32>
    %13 = arith.addf %9, %12 : vector<24x384xf32>
    %c0_15 = arith.constant 0 : index
    %c0_16 = arith.constant 0 : index
    %14 = vector.load %arg11[%c0_15, %c0_16] : memref<24x384xf32, #tpu.memory_space<vmem>>, vector<24x384xf32>
    tpu.vector_store %arg11[%c0_15, %c0_16], %13 {strides = array<i32>} : memref<24x384xf32, #tpu.memory_space<vmem>>, vector<24x384xf32>,
    %c0_i32_17 = arith.constant 0 : i32
    %15 = arith.cmpi eq, %arg2, %c0_i32_17 : i32
    %16 = arith.extui %15 : i1 to i32
    %c0_i32_18 = arith.constant 0 : i32
    %17 = arith.cmpi ne, %16, %c0_i32_18 : i32
    scf.if %17 {
      %c0_19 = arith.constant 0 : index
      %c0_20 = arith.constant 0 : index
      %18 = vector.load %arg10[%c0_19, %c0_20] : memref<24x384xf32, #tpu.memory_space<vmem>>, vector<24x384xf32>
      %c0_21 = arith.constant 0 : index
      %c0_22 = arith.constant 0 : index
      %19 = vector.load %arg7[%c0_21, %c0_22] : memref<1x384xf32, #tpu.memory_space<vmem>>, vector<1x384xf32>
      %20 = vector.broadcast %19 : vector<1x384xf32> to vector<24x384xf32>
      %21 = arith.addf %18, %20 : vector<24x384xf32>
      %c0_23 = arith.constant 0 : index
      %c0_24 = arith.constant 0 : index
      %22 = vector.load %arg8[%c0_23, %c0_24] : memref<24x384xf32, #tpu.memory_space<vmem>>, vector<24x384xf32>
      tpu.vector_store %arg8[%c0_23, %c0_24], %21 {strides = array<i32>} : memref<24x384xf32, #tpu.memory_space<vmem>>, vector<24x384xf32>,
      %c0_25 = arith.constant 0 : index
      %c0_26 = arith.constant 0 : index
      %23 = vector.load %arg11[%c0_25, %c0_26] : memref<24x384xf32, #tpu.memory_space<vmem>>, vector<24x384xf32>
      %c0_27 = arith.constant 0 : index
      %c0_28 = arith.constant 0 : index
      %24 = vector.load %arg9[%c0_27, %c0_28] : memref<24x384xf32, #tpu.memory_space<vmem>>, vector<24x384xf32>
      tpu.vector_store %arg9[%c0_27, %c0_28], %23 {strides = array<i32>} : memref<24x384xf32, #tpu.memory_space<vmem>>, vector<24x384xf32>,
    } else {
    }
    return
  }
  func.func @transform_0(%arg0: i32, %arg1: i32, %arg2: i32) -> (i32, i32) {
    %c0_i32 = arith.constant 0 : i32
    return %arg0, %arg2 : i32, i32
  }
  func.func @transform_1(%arg0: i32, %arg1: i32, %arg2: i32) -> (i32, i32) {
    %c0_i32 = arith.constant 0 : i32
    return %arg0, %arg2 : i32, i32
  }
  func.func @transform_2(%arg0: i32, %arg1: i32, %arg2: i32) -> (i32, i32) {
    %c0_i32 = arith.constant 0 : i32
    return %arg2, %arg1 : i32, i32
  }
  func.func @transform_3(%arg0: i32, %arg1: i32, %arg2: i32) -> (i32, i32) {
    %c0_i32 = arith.constant 0 : i32
    return %arg2, %arg1 : i32, i32
  }
  func.func @transform_4(%arg0: i32, %arg1: i32, %arg2: i32) -> (i32, i32) {
    %c0_i32 = arith.constant 0 : i32
    %c0_i32_0 = arith.constant 0 : i32
    return %c0_i32, %arg1 : i32, i32
  }
  func.func @transform_5(%arg0: i32, %arg1: i32, %arg2: i32) -> (i32, i32) {
    %c0_i32 = arith.constant 0 : i32
    return %arg0, %arg1 : i32, i32
  }
  func.func @transform_6(%arg0: i32, %arg1: i32, %arg2: i32) -> (i32, i32) {
    %c0_i32 = arith.constant 0 : i32
    return %arg0, %arg1 : i32, i32
  }
}

</mosaic_0001>

<bundles_post_ra>
// kernel: tpu_custom_call.1
= control target key start
LH: loop header
LB: loop body
LE: loop exit
PB: predicated region body
PF: predicated region fallthrough
CT: control target
= control target key end

     0   :  { %12 = vsyncpa [#allocation5], 0  ;;  %s1246_s0 = inlined_call_operand.hbm [shape: f32[24,128], index: 0, kind: input, shape index: {}]   ;;  %s1247_s1 = inlined_call_operand.hbm [shape: f32[24,128], index: 1, kind: input, shape index: {}]   ;;  %s1248_s2 = inlined_call_operand.hbm [shape: f32[128,384], index: 2, kind: input, shape index: {}]   ;;  %s1249_s3 = inlined_call_operand.hbm [shape: f32[128,384], index: 3, kind: input, shape index: {}]   ;;  %s1250_s4 = inlined_call_operand.vmem [shape: f32[1,384], index: 4, kind: input, shape index: {}]   ;;  %s1251_s5 = inlined_call_operand.hbm [shape: f32[24,384], index: 5, kind: output, shape index: {0}]   ;;  %s1252_s6 = inlined_call_operand.hbm [shape: f32[24,384], index: 6, kind: output, shape index: {1}]  }
   0x1   :  { %13 = vsyncpa [#allocation8], 0 }
   0x2   :  { %14 = vsyncpa [#allocation11], 0 }
   0x3   :  { %15 = vsyncpa [#allocation6], 0 }
   0x4   :  { %16 = vsyncpa [#allocation14], 0  ;;  %s1070_s21 = smov [#allocation7]   ;;  %s1071_s23 = smov [#allocation4]  }
   0x5   :  { %s34_s22 = sshll.u32 %s1070_s21, 4  ;;  %s22_s24 = sshll.u32 %s1071_s23, 4  ;;  %s35_s22 = int_to_ptr.vmem [resolvable:$true] %s34_s22  ;;  %s1118_s24 = int_to_ptr.vmem [resolvable:$true] %s22_s24 }
   0x6   :  { %s928_s27 = scalar_lea.hbm %s1247_s1, 384 }
   0x7   :  { %p929_p0 = scmp.ne.s32.totalorder %s1247_s1, %s928_s27  ;;  %p932_p1 = scmp.lt.u32.totalorder %s928_s27, %s1247_s1 }
   0x9   :  { %p934_p2 = pnand %p932_p1, %p929_p0 }
   0xb   :  { %937 = shalt.err (!%p934_p2)
}
   0xc   :  { %s938_s8 = scalar_lea.vmem %s35_s22, 384  ;;  %p943_p4 = scmp.lt.s32.totalorder %s35_s22, %s35_s22 }
   0xd   :  { %p939_p3 = scmp.ne.s32.totalorder %s35_s22, %s938_s8  ;;  %p944_p5 = scmp.lt.s32.totalorder %s938_s8, %s938_s8 }
   0xf   :  { %p945_p6 = por %p944_p5, %p943_p4 }
  0x11   :  { %p946_p7 = pnand %p945_p6, %p939_p3 }
  0x13   :  { %949 = shalt.err (!%p946_p7)
}
  0x14   :  { %s1072_s9 = smov 128   ;;  %s1073_s10 = smov 8  }
  0x15   :  { %40 = dma.hbm_to_vmem [thread:$0]  %s1247_s1, 384, %s35_s22, [#allocation8], %s1072_s9, %s1072_s9, %s1073_s10  }
  0x16   :  { %s950_s15 = scalar_lea.hbm %s1246_s0, 384 }
  0x17   :  { %p951_p8 = scmp.ne.s32.totalorder %s1246_s0, %s950_s15  ;;  %p954_p9 = scmp.lt.u32.totalorder %s950_s15, %s1246_s0 }
  0x19   :  { %p956_p10 = pnand %p954_p9, %p951_p8 }
  0x1b   :  { %959 = shalt.err (!%p956_p10)
}
  0x1c   :  { %s960_s20 = scalar_lea.vmem %s1118_s24, 384  ;;  %p965_p12 = scmp.lt.s32.totalorder %s1118_s24, %s1118_s24 }
  0x1d   :  { %p961_p11 = scmp.ne.s32.totalorder %s1118_s24, %s960_s20  ;;  %p966_p13 = scmp.lt.s32.totalorder %s960_s20, %s960_s20 }
  0x1f   :  { %p967_p0 = por %p966_p13, %p965_p12 }
  0x21   :  { %p968_p1 = pnand %p967_p0, %p961_p11 }
  0x23   :  { %971 = shalt.err (!%p968_p1)
}
  0x24   :  { %28 = dma.hbm_to_vmem [thread:$0]  %s1246_s0, 384, %s1118_s24, [#allocation5], %s1072_s9, %s1072_s9, %s1073_s10  }
  0x25   :  { %s1074_s22 = smov [#allocation9]   ;;  %s972_s27 = scalar_lea.hbm %s1248_s2, 6144 }
  0x26   :  { %s46_s23 = sshll.u32 %s1074_s22, 4  ;;  %p973_p2 = scmp.ne.s32.totalorder %s1248_s2, %s972_s27  ;;  %s47_s23 = int_to_ptr.vmem [resolvable:$true] %s46_s23 }
  0x27   :  { %p976_p3 = scmp.lt.u32.totalorder %s972_s27, %s1248_s2 }
  0x29   :  { %p978_p4 = pnand %p976_p3, %p973_p2 }
  0x2b   :  { %981 = shalt.err (!%p978_p4)
}
  0x2c   :  { %s982_s8 = scalar_lea.vmem %s47_s23, 6144  ;;  %p987_p6 = scmp.lt.s32.totalorder %s47_s23, %s47_s23 }
  0x2d   :  { %p983_p5 = scmp.ne.s32.totalorder %s47_s23, %s982_s8  ;;  %p988_p7 = scmp.lt.s32.totalorder %s982_s8, %s982_s8 }
  0x2f   :  { %p989_p8 = por %p988_p7, %p987_p6 }
  0x31   :  { %p990_p9 = pnand %p989_p8, %p983_p5 }
  0x33   :  { %993 = shalt.err (!%p990_p9)
}
  0x34   :  { %s1075_s0 = smov 384   ;;  %s1076_s24 = smov 24  }
  0x35   :  { %52 = dma.hbm_to_vmem [thread:$0]  %s1248_s2, 6144, %s47_s23, [#allocation8], %s1075_s0, %s1075_s0, %s1076_s24  }
  0x36   :  { %s1077_s11 = smov [#allocation10]   ;;  %s994_s15 = scalar_lea.hbm %s1249_s3, 6144 }
  0x37   :  { %s58_s12 = sshll.u32 %s1077_s11, 4  ;;  %p995_p10 = scmp.ne.s32.totalorder %s1249_s3, %s994_s15  ;;  %s59_s12 = int_to_ptr.vmem [resolvable:$true] %s58_s12 }
  0x38   :  { %p998_p11 = scmp.lt.u32.totalorder %s994_s15, %s1249_s3 }
  0x3a   :  { %p1000_p12 = pnand %p998_p11, %p995_p10 }
  0x3c   :  { %1003 = shalt.err (!%p1000_p12)
}
  0x3d   :  { %s1004_s20 = scalar_lea.vmem %s59_s12, 6144  ;;  %p1009_p0 = scmp.lt.s32.totalorder %s59_s12, %s59_s12 }
  0x3e   :  { %p1005_p13 = scmp.ne.s32.totalorder %s59_s12, %s1004_s20  ;;  %p1010_p1 = scmp.lt.s32.totalorder %s1004_s20, %s1004_s20 }
  0x40   :  { %p1011_p2 = por %p1010_p1, %p1009_p0 }
  0x42   :  { %p1012_p3 = pnand %p1011_p2, %p1005_p13 }
  0x44   :  { %1015 = shalt.err (!%p1012_p3)
}
  0x45   :  { %64 = dma.hbm_to_vmem [thread:$0]  %s1249_s3, 6144, %s59_s12, [#allocation11], %s1075_s0, %s1075_s0, %s1076_s24  }
  0x46   :  { %1060 = dma.done.wait [#allocation5], 384  }
  0x47   :  { %1061 = vsyncadd [#allocation5], 4294966912 }
  0x48   :  { %1062 = dma.done.wait [#allocation8], 6528  }
  0x49   :  { %1063 = vsyncadd [#allocation8], 4294960768 }
  0x4a   :  { %1064 = dma.done.wait [#allocation11], 6144  }
  0x4b   :  { %1065 = vsyncadd [#allocation11], 4294961152  ;;  %v1078_v0 = vmov 0.0|0.0   ;;  %v1079_v1 = vmov 0.0   ;;  %vm1080_vm0 = vmmov 0   ;;  %v114_v2 = vld [vmem:[#allocation9 + $0x8] sm:$0xff] }
  0x4c   :  { %835 = vmatprep.subr.bf16.mxu1 %v1078_v0  ;;  %225 = vmatprep.mubr.f32.mxu0 %v1079_v1  ;;  %v117_v3 = vld [vmem:[#allocation9 + $0x20] sm:$0xff]  ;;  %v116_v6 = vld [vmem:[#allocation9 + $0x18] sm:$0xff]  ;;  %v115_v7 = vld [vmem:[#allocation9 + $0x10] sm:$0xff] }
  0x4d   :  { %753 = vmatprep.mubr.msk.f32.mxu1 %vm1080_vm0, %v1079_v1  ;;  %v113_v4 = vld [vmem:[#allocation9] sm:$0xff]  ;;  %v803_v5 = vpack.c.bf16 %v117_v3, %v114_v2  ;;  %v118_v8 = vld [vmem:[#allocation9 + $0x28] sm:$0xff]  ;;  %v120_v11 = vld [vmem:[#allocation9 + $0x38] sm:$0xff] }
  0x4e   :  { %v805_v9 = vpack.c.bf16 %v116_v6, %v113_v4  ;;  %v836_v10 = vpack.c.bf16 %v118_v8, %v115_v7  ;;  %v123_v12 = vld [vmem:[#allocation9 + $0x50] sm:$0xff]  ;;  %v122_v15 = vld [vmem:[#allocation9 + $0x48] sm:$0xff]  ;;  %v121_v16 = vld [vmem:[#allocation9 + $0x40] sm:$0xff] }
  0x4f   :  { %v119_v13 = vld [vmem:[#allocation9 + $0x30] sm:$0xff]  ;;  %804 = vmatprep.subr.bf16.mxu0 %v803_v5  ;;  %v807_v14 = vpack.c.bf16 %v123_v12, %v120_v11  ;;  %v124_v17 = vld [vmem:[#allocation9 + $0x58] sm:$0xff]  ;;  %v126_v20 = vld [vmem:[#allocation9 + $0x68] sm:$0xff] }
  0x50   :  { %806 = vmatpush1.bf16.msra.mxu0 %v805_v9  ;;  %837 = vmatpush3.bf16.msra.mxu1 %v836_v10  ;;  %v809_v18 = vpack.c.bf16 %v122_v15, %v119_v13  ;;  %v839_v19 = vpack.c.bf16 %v124_v17, %v121_v16  ;;  %v129_v21 = vld [vmem:[#allocation9 + $0x80] sm:$0xff]  ;;  %v128_v24 = vld [vmem:[#allocation9 + $0x78] sm:$0xff]  ;;  %v127_v25 = vld [vmem:[#allocation9 + $0x70] sm:$0xff] }
  0x51   :  { %v125_v22 = vld [vmem:[#allocation9 + $0x60] sm:$0xff]  ;;  %808 = vmatprep.subr.bf16.mxu0 %v807_v14  ;;  %838 = vmatprep.subr.bf16.mxu1 %v1078_v0  ;;  %v811_v23 = vpack.c.bf16 %v129_v21, %v126_v20  ;;  %v130_v26 = vld [vmem:[#allocation9 + $0x88] sm:$0xff]  ;;  %v132_v27 = vld [vmem:[#allocation9 + $0x98] sm:$0xff] }
  0x52   :  { %v135_v28 = vld [vmem:[#allocation9 + $0xb0] sm:$0xff]  ;;  %v813_v29 = vpack.c.bf16 %v128_v24, %v125_v22  ;;  %v842_v30 = vpack.c.bf16 %v130_v26, %v127_v25  ;;  %v134_v33 = vld [vmem:[#allocation9 + $0xa8] sm:$0xff]  ;;  %v133_v34 = vld [vmem:[#allocation9 + $0xa0] sm:$0xff] }
  0x53   :  { %v131_v31 = vld [vmem:[#allocation9 + $0x90] sm:$0xff]  ;;  %v815_v32 = vpack.c.bf16 %v135_v28, %v132_v27  ;;  %v136_v35 = vld [vmem:[#allocation9 + $0xb8] sm:$0xff]  ;;  %v138_v36 = vld [vmem:[#allocation9 + $0xc8] sm:$0xff] }
  0x54   :  { %810 = vmatpush1.bf16.msra.mxu0 %v809_v18  ;;  %840 = vmatpush3.bf16.msra.mxu1 %v839_v19  ;;  %v141_v37 = vld [vmem:[#allocation9 + $0xe0] sm:$0xff]  ;;  %v817_v38 = vpack.c.bf16 %v134_v33, %v131_v31  ;;  %v845_v39 = vpack.c.bf16 %v136_v35, %v133_v34  ;;  %v140_v42 = vld [vmem:[#allocation9 + $0xd8] sm:$0xff]  ;;  %v139_v43 = vld [vmem:[#allocation9 + $0xd0] sm:$0xff] }
  0x55   :  { %812 = vmatprep.subr.bf16.mxu0 %v811_v23  ;;  %841 = vmatprep.subr.bf16.mxu1 %v1078_v0  ;;  %v137_v40 = vld [vmem:[#allocation9 + $0xc0] sm:$0xff]  ;;  %v819_v41 = vpack.c.bf16 %v141_v37, %v138_v36  ;;  %v142_v44 = vld [vmem:[#allocation9 + $0xe8] sm:$0xff]  ;;  %v144_v45 = vld [vmem:[#allocation9 + $0xf8] sm:$0xff] }
  0x56   :  { %v147_v46 = vld [vmem:[#allocation9 + $0x110] sm:$0xff]  ;;  %v821_v47 = vpack.c.bf16 %v140_v42, %v137_v40  ;;  %v848_v48 = vpack.c.bf16 %v142_v44, %v139_v43  ;;  %v146_v51 = vld [vmem:[#allocation9 + $0x108] sm:$0xff]  ;;  %v145_v52 = vld [vmem:[#allocation9 + $0x100] sm:$0xff] }
  0x57   :  { %v143_v49 = vld [vmem:[#allocation9 + $0xf0] sm:$0xff]  ;;  %v823_v50 = vpack.c.bf16 %v147_v46, %v144_v45  ;;  %v148_v53 = vld [vmem:[#allocation9 + $0x118] sm:$0xff]  ;;  %v150_v54 = vld [vmem:[#allocation9 + $0x128] sm:$0xff] }
  0x58   :  { %814 = vmatpush1.bf16.msra.mxu0 %v813_v29  ;;  %843 = vmatpush3.bf16.msra.mxu1 %v842_v30  ;;  %v153_v55 = vld [vmem:[#allocation9 + $0x140] sm:$0xff]  ;;  %v825_v56 = vpack.c.bf16 %v146_v51, %v143_v49  ;;  %v851_v57 = vpack.c.bf16 %v148_v53, %v145_v52  ;;  %v152_v60 = vld [vmem:[#allocation9 + $0x138] sm:$0xff]  ;;  %v151_v61 = vld [vmem:[#allocation9 + $0x130] sm:$0xff] }
  0x59   :  { %816 = vmatprep.subr.bf16.mxu0 %v815_v32  ;;  %844 = vmatprep.subr.bf16.mxu1 %v1078_v0  ;;  %v149_v58 = vld [vmem:[#allocation9 + $0x120] sm:$0xff]  ;;  %v827_v59 = vpack.c.bf16 %v153_v55, %v150_v54  ;;  %v154_v62 = vld [vmem:[#allocation9 + $0x148] sm:$0xff]  ;;  %v156_v63 = vld [vmem:[#allocation9 + $0x158] sm:$0xff] }
  0x5a   :  { %v159_v2 = vld [vmem:[#allocation9 + $0x170] sm:$0xff]  ;;  %v829_v3 = vpack.c.bf16 %v152_v60, %v149_v58  ;;  %v854_v4 = vpack.c.bf16 %v154_v62, %v151_v61  ;;  %v158_v7 = vld [vmem:[#allocation9 + $0x168] sm:$0xff]  ;;  %v157_v8 = vld [vmem:[#allocation9 + $0x160] sm:$0xff] }
  0x5b   :  { %v155_v5 = vld [vmem:[#allocation9 + $0x150] sm:$0xff]  ;;  %v831_v6 = vpack.c.bf16 %v159_v2, %v156_v63  ;;  %v160_v9 = vld [vmem:[#allocation9 + $0x178] sm:$0xff]  ;;  %v355_v10 = vld [vmem:[#allocation10 + $0x8] sm:$0xff] }
  0x5c   :  { %818 = vmatpush1.bf16.msra.mxu0 %v817_v38  ;;  %846 = vmatpush3.bf16.msra.mxu1 %v845_v39  ;;  %v358_v11 = vld [vmem:[#allocation10 + $0x20] sm:$0xff]  ;;  %v833_v12 = vpack.c.bf16 %v158_v7, %v155_v5  ;;  %v857_v13 = vpack.c.bf16 %v160_v9, %v157_v8  ;;  %v357_v16 = vld [vmem:[#allocation10 + $0x18] sm:$0xff]  ;;  %v356_v17 = vld [vmem:[#allocation10 + $0x10] sm:$0xff] }
  0x5d   :  { %820 = vmatprep.subr.bf16.mxu0 %v819_v41  ;;  %847 = vmatprep.subr.bf16.mxu1 %v1078_v0  ;;  %v354_v14 = vld [vmem:[#allocation10] sm:$0xff]  ;;  %v859_v15 = vpack.c.bf16 %v358_v11, %v355_v10  ;;  %v359_v18 = vld [vmem:[#allocation10 + $0x28] sm:$0xff]  ;;  %v361_v19 = vld [vmem:[#allocation10 + $0x38] sm:$0xff] }
  0x5e   :  { %v364_v20 = vld [vmem:[#allocation10 + $0x50] sm:$0xff]  ;;  %v861_v22 = vpack.c.bf16 %v357_v16, %v354_v14  ;;  %v892_v23 = vpack.c.bf16 %v359_v18, %v356_v17  ;;  %v363_v26 = vld [vmem:[#allocation10 + $0x48] sm:$0xff]  ;;  %v362_v27 = vld [vmem:[#allocation10 + $0x40] sm:$0xff] }
  0x5f   :  { %v110_v21 = vld [vmem:[#allocation4] sm:$0xff]  ;;  %v863_v25 = vpack.c.bf16 %v364_v20, %v361_v19  ;;  %v365_v28 = vld [vmem:[#allocation10 + $0x58] sm:$0xff]  ;;  %v367_v29 = vld [vmem:[#allocation10 + $0x68] sm:$0xff] }
  0x60   :  { %822 = vmatpush1.bf16.msra.mxu0 %v821_v47  ;;  %849 = vmatpush3.bf16.msra.mxu1 %v848_v48  ;;  %v360_v24 = vld [vmem:[#allocation10 + $0x30] sm:$0xff]  ;;  %v370_v30 = vld [vmem:[#allocation10 + $0x80] sm:$0xff]  ;;  %v895_v32 = vpack.c.bf16 %v365_v28, %v362_v27  ;;  %v111_v34 = vld [vmem:[#allocation4 + $0x8] sm:$0xff] }
  0x61   :  { %824 = vmatprep.subr.bf16.mxu0 %v823_v50  ;;  %850 = vmatprep.subr.bf16.mxu1 %v1078_v0  ;;  %v865_v31 = vpack.c.bf16 %v363_v26, %v360_v24  ;;  %v366_v33 = vld [vmem:[#allocation10 + $0x60] sm:$0xff]  ;;  %v867_v35 = vpack.c.bf16 %v370_v30, %v367_v29  ;;  %v369_v36 = vld [vmem:[#allocation10 + $0x78] sm:$0xff]  ;;  %v368_v37 = vld [vmem:[#allocation10 + $0x70] sm:$0xff] }
  0x62   :  { %v371_v38 = vld [vmem:[#allocation10 + $0x88] sm:$0xff]  ;;  %v373_v39 = vld [vmem:[#allocation10 + $0x98] sm:$0xff]  ;;  %v376_v40 = vld [vmem:[#allocation10 + $0xb0] sm:$0xff]  ;;  %v869_v41 = vpack.c.bf16 %v369_v36, %v366_v33 }
  0x63   :  { %v898_v42 = vpack.c.bf16 %v371_v38, %v368_v37  ;;  %v372_v43 = vld [vmem:[#allocation10 + $0x90] sm:$0xff]  ;;  %v112_v44 = vld [vmem:[#allocation4 + $0x10] sm:$0xff]  ;;  %v871_v45 = vpack.c.bf16 %v376_v40, %v373_v39  ;;  %v375_v46 = vld [vmem:[#allocation10 + $0xa8] sm:$0xff] }
  0x64   :  { %826 = vmatpush1.bf16.msra.mxu0 %v825_v56  ;;  %852 = vmatpush3.bf16.msra.mxu1 %v851_v57  ;;  %v374_v47 = vld [vmem:[#allocation10 + $0xa0] sm:$0xff]  ;;  %v377_v48 = vld [vmem:[#allocation10 + $0xb8] sm:$0xff]  ;;  %v379_v49 = vld [vmem:[#allocation10 + $0xc8] sm:$0xff]  ;;  %v873_v51 = vpack.c.bf16 %v375_v46, %v372_v43 }
  0x65   :  { %828 = vmatprep.subr.bf16.mxu0 %v827_v59  ;;  %853 = vmatprep.subr.bf16.mxu1 %v1078_v0  ;;  %v382_v50 = vld [vmem:[#allocation10 + $0xe0] sm:$0xff]  ;;  %v901_v52 = vpack.c.bf16 %v377_v48, %v374_v47  ;;  %v381_v55 = vld [vmem:[#allocation10 + $0xd8] sm:$0xff]  ;;  %v380_v56 = vld [vmem:[#allocation10 + $0xd0] sm:$0xff] }
  0x66   :  { %v378_v53 = vld [vmem:[#allocation10 + $0xc0] sm:$0xff]  ;;  %v875_v54 = vpack.c.bf16 %v382_v50, %v379_v49  ;;  %v383_v57 = vld [vmem:[#allocation10 + $0xe8] sm:$0xff]  ;;  %v385_v58 = vld [vmem:[#allocation10 + $0xf8] sm:$0xff] }
  0x67   :  { %v388_v59 = vld [vmem:[#allocation10 + $0x110] sm:$0xff]  ;;  %v877_v60 = vpack.c.bf16 %v381_v55, %v378_v53  ;;  %v904_v61 = vpack.c.bf16 %v383_v57, %v380_v56  ;;  %v387_v2 = vld [vmem:[#allocation10 + $0x108] sm:$0xff]  ;;  %v390_v9 = vld [vmem:[#allocation10 + $0x120] sm:$0xff] }
  0x68   :  { %830 = vmatpush1.bf16.msra.mxu0 %v829_v3  ;;  %855 = vmatpush3.bf16.msra.mxu1 %v854_v4  ;;  %v384_v62 = vld [vmem:[#allocation10 + $0xf0] sm:$0xff]  ;;  %v879_v63 = vpack.c.bf16 %v388_v59, %v385_v58  ;;  %v386_v3 = vld [vmem:[#allocation10 + $0x100] sm:$0xff]  ;;  %v389_v4 = vld [vmem:[#allocation10 + $0x118] sm:$0xff] }
  0x69   :  { %832 = vmatprep.subr.bf16.mxu0 %v831_v6  ;;  %856 = vmatprep.subr.bf16.mxu1 %v1078_v0  ;;  %v391_v5 = vld [vmem:[#allocation10 + $0x128] sm:$0xff]  ;;  %v394_v6 = vld [vmem:[#allocation10 + $0x140] sm:$0xff]  ;;  %v881_v7 = vpack.c.bf16 %v387_v2, %v384_v62  ;;  %v907_v8 = vpack.c.bf16 %v389_v4, %v386_v3  ;;  %v393_v11 = vld [vmem:[#allocation10 + $0x138] sm:$0xff] }
  0x6a   :  { %v883_v10 = vpack.c.bf16 %v394_v6, %v391_v5  ;;  %v397_v14 = vld [vmem:[#allocation10 + $0x158] sm:$0xff]  ;;  %v885_v16 = vpack.c.bf16 %v393_v11, %v390_v9  ;;  %v396_v18 = vld [vmem:[#allocation10 + $0x150] sm:$0xff]  ;;  %v399_v20 = vld [vmem:[#allocation10 + $0x168] sm:$0xff] }
  0x6b   :  { %v352_v26 = vld [vmem:[#allocation7 + $0x8] sm:$0xff]  ;;  %v353_v27 = vld [vmem:[#allocation7 + $0x10] sm:$0xff] }
  0x6c   :  { %834 = vmatpush1.bf16.msra.mxu0 %v833_v12  ;;  %858 = vmatpush3.bf16.msra.mxu1 %v857_v13  ;;  %v392_v12 = vld [vmem:[#allocation10 + $0x130] sm:$0xff]  ;;  %v395_v13 = vld [vmem:[#allocation10 + $0x148] sm:$0xff] }
  0x6d   :  { %860 = vmatprep.subr.bf16.mxu0 %v859_v15  ;;  %891 = vmatprep.subr.bf16.mxu1 %v1078_v0  ;;  %v400_v15 = vld [vmem:[#allocation10 + $0x170] sm:$0xff]  ;;  %v910_v17 = vpack.c.bf16 %v395_v13, %v392_v12 }
  0x6e   :  { %v887_v19 = vpack.c.bf16 %v400_v15, %v397_v14 }
  0x6f   :  { %226 = vmatmul.mubr.f32.vlgmr.msra.gmra.mrb[0].mxu0 %v110_v21  ;;  %754 = vmatmul.mubr.f32.vlgmr.msra.gmra.mrb[0].mxu1 %v110_v21  ;;  %v398_v21 = vld [vmem:[#allocation10 + $0x160] sm:$0xff] }
  0x70   :  { %862 = vmatpush1.bf16.msra.mxu0 %v861_v22  ;;  %893 = vmatpush3.bf16.msra.mxu1 %v892_v23  ;;  %v401_v22 = vld [vmem:[#allocation10 + $0x178] sm:$0xff]  ;;  %v889_v23 = vpack.c.bf16 %v399_v20, %v396_v18 }
  0x71   :  { %864 = vmatprep.subr.bf16.mxu0 %v863_v25  ;;  %894 = vmatprep.subr.bf16.mxu1 %v1078_v0  ;;  %v913_v24 = vpack.c.bf16 %v401_v22, %v398_v21  ;;  %v351_v25 = vld [vmem:[#allocation7] sm:$0xff] }
  0x72   :  { %231 = vmatprep.mubr.f32.mxu0 %v1079_v1  ;;  %756 = vmatprep.mubr.msk.f32.mxu1 %vm1080_vm0, %v1079_v1 }
  0x73   :  { %232 = vmatmul.mubr.f32.gmra.mrb[2].mxu0 %v111_v34  ;;  %757 = vmatmul.mubr.f32.gmra.mrb[2].mxu1 %v111_v34 }
  0x74   :  { %866 = vmatpush1.bf16.msra.mxu0 %v865_v31  ;;  %896 = vmatpush3.bf16.msra.mxu1 %v895_v32  ;;  %v595_v31 = vld [vmem:[%s1250_s4] sm:$0x7]  ;;  %s1081_s4 = smov [#allocation12]  }
  0x75   :  { %868 = vmatprep.subr.bf16.mxu0 %v867_v35  ;;  %897 = vmatprep.subr.bf16.mxu1 %v1078_v0  ;;  %s653_s22 = sshll.u32 %s1081_s4, 4  ;;  %s654_s22 = int_to_ptr.vmem [resolvable:$true] %s653_s22 }
  0x76   :  { %237 = vmatprep.mubr.f32.mxu0 %v1079_v1  ;;  %759 = vmatprep.mubr.msk.f32.mxu1 %vm1080_vm0, %v1079_v1  ;;  %s1016_s23 = scalar_lea.vmem %s654_s22, 1152  ;;  %p1021_p5 = scmp.lt.s32.totalorder %s654_s22, %s654_s22 }
  0x77   :  { %238 = vmatmul.mubr.f32.gmra.mrb[4].mxu0 %v112_v44  ;;  %760 = vmatmul.mubr.f32.gmra.mrb[4].mxu1 %v112_v44  ;;  %p1017_p4 = scmp.ne.s32.totalorder %s654_s22, %s1016_s23  ;;  %p1022_p6 = scmp.lt.s32.totalorder %s1016_s23, %s1016_s23 }
  0x78   :  { %870 = vmatpush1.bf16.msra.mxu0 %v869_v41  ;;  %899 = vmatpush3.bf16.msra.mxu1 %v898_v42 }
  0x79   :  { %872 = vmatprep.subr.bf16.mxu0 %v871_v45  ;;  %900 = vmatprep.subr.bf16.mxu1 %v1078_v0  ;;  %p1023_p7 = por %p1022_p6, %p1021_p5 }
  0x7a   :  { %466 = vmatprep.mubr.f32.mxu0 %v1079_v1  ;;  %794 = vmatprep.mubr.msk.f32.mxu1 %vm1080_vm0, %v1079_v1 }
  0x7b   :  { %p1024_p8 = pnand %p1023_p7, %p1017_p4 }
  0x7c   :  { %874 = vmatpush1.bf16.msra.mxu0 %v873_v51  ;;  %902 = vmatpush3.bf16.msra.mxu1 %v901_v52 }
  0x7d   :  { %876 = vmatprep.subr.bf16.mxu0 %v875_v54  ;;  %903 = vmatprep.subr.bf16.mxu1 %v1078_v0 }
  0x80   :  { %878 = vmatpush1.bf16.msra.mxu0 %v877_v60  ;;  %905 = vmatpush3.bf16.msra.mxu1 %v904_v61 }
  0x81   :  { %880 = vmatprep.subr.bf16.mxu0 %v879_v63  ;;  %906 = vmatprep.subr.bf16.mxu1 %v1078_v0 }
  0x84   :  { %882 = vmatpush1.bf16.msra.mxu0 %v881_v7  ;;  %908 = vmatpush3.bf16.msra.mxu1 %v907_v8 }
  0x85   :  { %884 = vmatprep.subr.bf16.mxu0 %v883_v10  ;;  %909 = vmatprep.subr.bf16.mxu1 %v1078_v0 }
  0x88   :  { %886 = vmatpush1.bf16.msra.mxu0 %v885_v16  ;;  %911 = vmatpush3.bf16.msra.mxu1 %v910_v17 }
  0x89   :  { %888 = vmatprep.subr.bf16.mxu0 %v887_v19  ;;  %912 = vmatprep.subr.bf16.mxu1 %v1078_v0  ;;  %v597_v0 = vlaneseq }
  0x8b   :  { %v598_v28 = vshrl.u32 %v597_v0, 7 }
  0x8c   :  { %890 = vmatpush1.bf16.msra.mxu0 %v889_v23  ;;  %914 = vmatpush3.bf16.msra.mxu1 %v913_v24 }
  0x8d   :  { %v599_v29 = vsub.s32 0, %v598_v28  ;;  %v607_v30 = vsub.s32 2, %v598_v28  ;;  %v603_v32 = vsub.s32 1, %v598_v28 }
  0x8f   :  { %467 = vmatmul.mubr.f32.vlgmr.msra.gmra.mrb[6].mxu0 %v351_v25  ;;  %795 = vmatmul.mubr.f32.vlgmr.msra.gmra.mrb[6].mxu1 %v351_v25  ;;  %v600_v33 = vrot.slane %v595_v31, %v599_v29  ;;  %v608_v34 = vrot.slane %v595_v31, %v607_v30  ;;  %v604_v35 = vrot.slane %v595_v31, %v603_v32 }
  0x90   :  { %472 = vmatprep.mubr.f32.mxu0 %v1079_v1  ;;  %797 = vmatprep.mubr.msk.f32.mxu1 %vm1080_vm0, %v1079_v1 }
  0x93   :  { %473 = vmatmul.mubr.f32.gmra.mrb[8].mxu0 %v352_v26  ;;  %798 = vmatmul.mubr.f32.gmra.mrb[8].mxu1 %v352_v26 }
  0x94   :  { %478 = vmatprep.mubr.f32.mxu0 %v1079_v1  ;;  %800 = vmatprep.mubr.msk.f32.mxu1 %vm1080_vm0, %v1079_v1 }
  0x97   :  { %479 = vmatmul.mubr.f32.gmra.mrb[10].mxu0 %v353_v27  ;;  %801 = vmatmul.mubr.f32.gmra.mrb[10].mxu1 %v353_v27 }
 0x142   :  { %v227_v36 = vpop.f32.mrb[0].mxu0  ;;  %v310_v37 = vpop.f32.mrb[0].mxu1 }
 0x143   :  { %v612_v38 = vadd.f32 %v600_v33, %v227_v36  ;;  %v229_v39 = vpop.f32.mrb[1].mxu0  ;;  %v614_v1 = vadd.f32 %v608_v34, %v310_v37  ;;  %v755_v40 = vpop.f32.mrb[1].mxu1 }
 0x144   :  { %v613_v41 = vadd.f32 %v604_v35, %v229_v39 }
 0x145   :  { %621 = vst [vmem:[#allocation12] sm:$0xff] %v612_v38  ;;  %623 = vst [vmem:[#allocation12 + $0x10] sm:$0xff] %v614_v1 }
 0x146   :  { %622 = vst [vmem:[#allocation12 + $0x8] sm:$0xff] %v613_v41  ;;  %v233_v42 = vpop.f32.mrb[2].mxu0  ;;  %v315_v43 = vpop.f32.mrb[2].mxu1 }
 0x147   :  { %v615_v44 = vadd.f32 %v600_v33, %v233_v42  ;;  %v235_v45 = vpop.f32.mrb[3].mxu0  ;;  %v617_v46 = vadd.f32 %v608_v34, %v315_v43  ;;  %v758_v47 = vpop.f32.mrb[3].mxu1 }
 0x148   :  { %v616_v48 = vadd.f32 %v604_v35, %v235_v45 }
 0x149   :  { %624 = vst [vmem:[#allocation12 + $0x18] sm:$0xff] %v615_v44  ;;  %626 = vst [vmem:[#allocation12 + $0x28] sm:$0xff] %v617_v46 }
 0x14a   :  { %625 = vst [vmem:[#allocation12 + $0x20] sm:$0xff] %v616_v48  ;;  %v239_v49 = vpop.f32.mrb[4].mxu0  ;;  %v320_v50 = vpop.f32.mrb[4].mxu1 }
 0x14b   :  { %v618_v51 = vadd.f32 %v600_v33, %v239_v49  ;;  %v241_v52 = vpop.f32.mrb[5].mxu0  ;;  %v620_v53 = vadd.f32 %v608_v34, %v320_v50  ;;  %v761_v54 = vpop.f32.mrb[5].mxu1 }
 0x14c   :  { %v619_v55 = vadd.f32 %v604_v35, %v241_v52 }
 0x14d   :  { %627 = vst [vmem:[#allocation12 + $0x30] sm:$0xff] %v618_v51  ;;  %629 = vst [vmem:[#allocation12 + $0x40] sm:$0xff] %v620_v53 }
 0x14e   :  { %628 = vst [vmem:[#allocation12 + $0x38] sm:$0xff] %v619_v55 }
 0x14f   :  { %1027 = shalt.err (!%p1024_p8)
}
 0x150   :  { %s1028_s27 = scalar_lea.hbm %s1251_s5, 1152 }
 0x151   :  { %p1029_p9 = scmp.ne.s32.totalorder %s1251_s5, %s1028_s27  ;;  %p1032_p10 = scmp.lt.u32.totalorder %s1028_s27, %s1251_s5 }
 0x153   :  { %p1034_p11 = pnand %p1032_p10, %p1029_p9 }
 0x155   :  { %1037 = shalt.err (!%p1034_p11)
}
 0x156   :  { %659 = dma.vmem_to_hbm [thread:$0]  %s654_s22, 1152, %s1251_s5, [#allocation6], %s1075_s0, %s1075_s0, %s1076_s24  }
 0x157   :  { %s1082_s10 = smov [#allocation13]  }
 0x158   :  { %s665_s11 = sshll.u32 %s1082_s10, 4  ;;  %s666_s11 = int_to_ptr.vmem [resolvable:$true] %s665_s11 }
 0x159   :  { %s1038_s5 = scalar_lea.vmem %s666_s11, 1152  ;;  %p1043_p13 = scmp.lt.s32.totalorder %s666_s11, %s666_s11 }
 0x15a   :  { %p1039_p12 = scmp.ne.s32.totalorder %s666_s11, %s1038_s5  ;;  %p1044_p0 = scmp.lt.s32.totalorder %s1038_s5, %s1038_s5 }
 0x15c   :  { %p1045_p1 = por %p1044_p0, %p1043_p13 }
 0x15e   :  { %p1046_p2 = pnand %p1045_p1, %p1039_p12 }
 0x162   :  { %v468_v56 = vpop.f32.mrb[6].mxu0  ;;  %v551_v57 = vpop.f32.mrb[6].mxu1 }
 0x163   :  { %639 = vst [vmem:[#allocation13] sm:$0xff] %v468_v56  ;;  %641 = vst [vmem:[#allocation13 + $0x10] sm:$0xff] %v551_v57  ;;  %v470_v58 = vpop.f32.mrb[7].mxu0  ;;  %v796_v59 = vpop.f32.mrb[7].mxu1 }
 0x164   :  { %640 = vst [vmem:[#allocation13 + $0x8] sm:$0xff] %v470_v58 }
 0x166   :  { %v474_v60 = vpop.f32.mrb[8].mxu0  ;;  %v556_v61 = vpop.f32.mrb[8].mxu1 }
 0x167   :  { %642 = vst [vmem:[#allocation13 + $0x18] sm:$0xff] %v474_v60  ;;  %644 = vst [vmem:[#allocation13 + $0x28] sm:$0xff] %v556_v61  ;;  %v476_v62 = vpop.f32.mrb[9].mxu0  ;;  %v799_v63 = vpop.f32.mrb[9].mxu1 }
 0x168   :  { %643 = vst [vmem:[#allocation13 + $0x20] sm:$0xff] %v476_v62 }
 0x16a   :  { %v480_v2 = vpop.f32.mrb[10].mxu0  ;;  %v561_v3 = vpop.f32.mrb[10].mxu1 }
 0x16b   :  { %645 = vst [vmem:[#allocation13 + $0x30] sm:$0xff] %v480_v2  ;;  %647 = vst [vmem:[#allocation13 + $0x40] sm:$0xff] %v561_v3  ;;  %v482_v4 = vpop.f32.mrb[11].mxu0  ;;  %v802_v5 = vpop.f32.mrb[11].mxu1 }
 0x16c   :  { %646 = vst [vmem:[#allocation13 + $0x38] sm:$0xff] %v482_v4 }
 0x16d   :  { %1049 = shalt.err (!%p1046_p2)
}
 0x16e   :  { %s1050_s14 = scalar_lea.hbm %s1252_s6, 1152 }
 0x16f   :  { %p1051_p3 = scmp.ne.s32.totalorder %s1252_s6, %s1050_s14  ;;  %p1054_p4 = scmp.lt.u32.totalorder %s1050_s14, %s1252_s6 }
 0x171   :  { %p1056_p5 = pnand %p1054_p4, %p1051_p3 }
 0x173   :  { %1059 = shalt.err (!%p1056_p5)
}
 0x174   :  { %671 = dma.vmem_to_hbm [thread:$0]  %s666_s11, 1152, %s1252_s6, [#allocation14], %s1075_s0, %s1075_s0, %s1076_s24  }
 0x175   :  { %1066 = dma.done.wait [#allocation6], 1152  }
 0x176   :  { %1067 = vsyncadd [#allocation6], 4294966144 }
 0x177   :  { %1068 = dma.done.wait [#allocation14], 1152  }
 0x178   :  { %1069 = vsyncadd [#allocation14], 4294966144 }
 0x179   :  { %678 = vsyncpa [#allocation5], 1 }
 0x17a   :  { %679 = vsyncpa [#allocation8], 1 }
 0x17b   :  { %680 = vsyncpa [#allocation11], 1 }
 0x17c   :  { %681 = vsyncpa [#allocation6], 1 }
 0x17d   :  { %682 = vsyncpa [#allocation14], 1 }

</bundles_post_ra>
